<compile_context>
chip_gen: v6e
topology: v6e:2x2x1
jax: 0.10.0
libtpu: 0.0.40
codegen_flags: <defaults>
</compile_context>

<pallas_src>
import functools

import jax
import jax.numpy as jnp
from jax import lax
from jax.experimental import pallas as pl
from jax.experimental.pallas import tpu as pltpu

LANE = 128  # lane-dense slab width for node/edge feature I/O


# ----------------------------------------------------------------------------------
# Pallas kernel: one (possibly branch-fused) GRNFormerLayerBlock forward
#   out  = LeakyReLU( Linear( beta * x_skip + (1-beta) * attn_out ) )
#   attn = per-destination softmax over edges, per head  (PyG TransformerConv)
# Branch fusion: conv_mu and conv_logstd share x/ea/S/D, so their heads are simply
# concatenated into 2*H independent "virtual heads"; beta / transf1 weights are
# block-diagonal per branch (built on the host).
# ----------------------------------------------------------------------------------
def grnformer_block_kernel(x_ref, ea_ref, S_ref, D_ref,
                           wqkvr_ref, bqkvr_ref, we2_ref, wbeta_ref,
                           w1_ref, b1_ref, R_ref,
                           out_ref, alpha_ref,
                           *, heads_total, head_ch, n_branch, slope):
    f32, bf16 = jnp.float32, jnp.bfloat16
    Ht, C, NB = heads_total, head_ch, n_branch
    HCt = Ht * C

    x = x_ref[...]                   # [N, 128]  bf16 (zero-padded node features)
    ea = ea_ref[...]                 # [E, 128]  bf16 (zero-padded edge features)
    S = S_ref[...]                   # [E, N]    bf16 one-hot(src)
    D = D_ref[...]                   # [E, N]    bf16 one-hot(dst)
    R = R_ref[...]                   # [HCt, Ht] bf16 block-diag head reduce/expand

    N = x.shape[0]
    E = ea.shape[0]
    inv_sqrt_c = f32(1.0 / (float(C) ** 0.5))
    NEG = f32(-1e30)                 # finite mask value (keeps matmul paths NaN-free)

    # ---- fused Q|K|V|skip projection: ONE wide bf16 MXU matmul, then slice ----
    qkvr = jnp.dot(x, wqkvr_ref[...], preferred_element_type=f32) + bqkvr_ref[...]  # [N,4HCt]
    q = qkvr[:, 0 * HCt:1 * HCt]
    kv = qkvr[:, 1 * HCt:3 * HCt]                                    # [N, 2HCt]  k|v
    x_r = qkvr[:, 3 * HCt:4 * HCt]

    # ---- gather q at destinations (one-hot matmul, bf16 MXU, f32 accumulate) ----
    q_i = jnp.dot(D, q.astype(bf16), preferred_element_type=f32)     # [E, HCt]

    # ---- fused source gather + edge projection in ONE MXU pass ----
    #   [S | ea] @ [[k|v] ; [we|we]]  ->  [k_e | v_e]   (ep temp and 2 adds removed)
    A = jnp.concatenate([S, ea], axis=1)                             # [E, N+128] bf16
    B = jnp.concatenate([kv.astype(bf16), we2_ref[...]], axis=0)     # [N+128, 2HCt] bf16
    ke_ve = jnp.dot(A, B, preferred_element_type=f32)                # [E, 2HCt]
    k_e = ke_ve[:, :HCt]
    v_e = ke_ve[:, HCt:]

    # ---- per-head scores for ALL (virtual) heads at once (block-diag reduce) ----
    s = jnp.dot((q_i * k_e).astype(bf16), R,
                preferred_element_type=f32) * inv_sqrt_c             # [E, Ht]

    # ---- segment softmax over edges sharing a destination node ----
    # hoisted additive mask (review): one (1-D)*NEG instead of per-head compare+select
    neg = (1.0 - D.astype(f32)) * NEG                                # [E, N] {0,-1e30}
    m_rows = []
    for h in range(Ht):                                              # Ht static & tiny
        m_rows.append(jnp.max(s[:, h:h + 1] + neg, axis=0, keepdims=True))   # [1, N]
    m_hn = jnp.concatenate(m_rows, axis=0)                           # [Ht, N]
    # gather each edge's per-destination max: m_e[e,h] = m_hn[h, dst(e)]
    # (bf16 m -> p can marginally exceed 1; benign for the softmax)
    m_e = lax.dot_general(D, m_hn.astype(bf16),
                          (((1,), (1,)), ((), ())),
                          preferred_element_type=f32)                # [E, Ht]
    p = jnp.exp(s - m_e)                                             # [E, Ht]

    # broadcast p across each head's C channels: p_wide[e, h*C+c] = p[e, h]
    p_wide = lax.dot_general(p.astype(bf16), R,
                             (((1,), (1,)), ((), ())),
                             preferred_element_type=f32)             # [E, HCt]

    # ---- ONE fused scatter: unnormalized messages + softmax denominators ----
    # bf16 scatter input: ~1e-3 relative error vs f32 reference (documented tradeoff).
    scat_in = jnp.concatenate([v_e * p_wide, p], axis=1).astype(bf16)  # [E, HCt+Ht]
    scat = lax.dot_general(D, scat_in,
                           (((0,), (0,)), ((), ())),
                           preferred_element_type=f32)               # [N, HCt+Ht]
    num = scat[:, :HCt]                                              # sum_e p*v
    den = scat[:, HCt:]                                              # [N, Ht] sum_e p

    # ---- single guarded reciprocal at node granularity (EUP); shared by agg & alpha ----
    inv = pl.reciprocal(jnp.where(den > 0.0, den, 1.0), approx=True)  # [N, Ht]
    inv_wide = lax.dot_general(inv.astype(bf16), R,
                               (((1,), (1,)), ((), ())),
                               preferred_element_type=f32)            # [N, HCt]
    agg = num * inv_wide                                              # normalized messages

    # per-edge attention weights: alpha = p * inv[dst]
    inv_e = jnp.dot(D, inv.astype(bf16), preferred_element_type=f32)  # [E, Ht]
    alpha = p * inv_e

    # ---- beta-gated skip (lin_beta folded: [agg | x_r] @ [wbo+wbd ; wbr-wbd], per branch) ----
    bx = jnp.concatenate([agg, x_r], axis=1).astype(bf16)             # [N, 2HCt]
    b = jnp.dot(bx, wbeta_ref[...], preferred_element_type=f32)       # [N, NB]
    beta = 1.0 / (1.0 + jnp.exp(-b))
    if NB == 1:
        beta_wide = beta                                              # [N,1] broadcasts
    else:
        hc_b = HCt // NB
        beta_wide = jnp.concatenate(
            [jnp.broadcast_to(beta[:, i:i + 1], (N, hc_b)) for i in range(NB)], axis=1)
    o = beta_wide * x_r + (1.0 - beta_wide) * agg                     # [N, HCt]

    # ---- transf1 Linear + LeakyReLU; w1/b1 pre-padded -> directly lane-dense slab ----
    o = jnp.dot(o.astype(bf16), w1_ref[...], preferred_element_type=f32) + b1_ref[...]
    o = jnp.where(o >= 0.0, o, f32(slope) * o)                        # [N, NB*128]
    out_ref[...] = o.astype(out_ref.dtype)

    # alpha lane-dense slab (tiny; Ht <= 4 here so keep the concat)
    alpha_ref[...] = jnp.concatenate(
        [alpha, jnp.zeros((E, LANE - Ht), f32)], axis=1).astype(alpha_ref.dtype)


# ----------------------------------------------------------------------------------
# Wrapper: one (possibly branch-fused) block as a single Pallas call
# ----------------------------------------------------------------------------------
def _pick_vmem_limit(est_bytes):
    cap = 64 * 2 ** 20                       # conservative default (v7x physical VMEM)
    try:
        cap = int(pltpu.get_tpu_info().vmem_capacity_bytes)
    except Exception:
        pass
    hi = int(cap * 0.85)                     # leave headroom for compiler scratch
    lo = 32 * 2 ** 20
    want = int(2.5 * est_bytes) + 8 * 2 ** 20
    return int(min(hi, max(lo, want)))


def grnformer_block(x_pad, ea_pad, S, D, packed, *, heads, out_ch, n_branch, out_dtype):
    """One GRNFormerLayerBlock (or two fused branches) as a single Pallas call."""
    N = x_pad.shape[0]
    E = ea_pad.shape[0]
    Ht = n_branch * heads
    kernel = functools.partial(grnformer_block_kernel, heads_total=Ht,
                               head_ch=out_ch, n_branch=n_branch, slope=0.01)
    ins = (x_pad, ea_pad, S, D) + tuple(packed)

    # VMEM budget from actual buffer sizes (inputs + outputs + dominant temporaries).
    est = sum(int(a.size) * a.dtype.itemsize for a in ins)
    est += N * n_branch * LANE * 4 + E * LANE * 4          # outputs (f32 upper bound)
    est += E * (N + LANE) * 2                              # [S | ea] fused operand
    est += 3 * E * N * 4                                   # additive mask + masked-max temps
    est += E * (6 * Ht * out_ch + 4 * Ht) * 4              # edge-level f32 temporaries
    vmem = _pick_vmem_limit(est)

    out_pad, alpha_pad = pl.pallas_call(
        kernel,
        out_shape=(jax.ShapeDtypeStruct((N, n_branch * LANE), out_dtype),
                   jax.ShapeDtypeStruct((E, LANE), out_dtype)),
        in_specs=[pl.BlockSpec(memory_space=pltpu.MemorySpace.VMEM)] * len(ins),
        out_specs=(pl.BlockSpec(memory_space=pltpu.MemorySpace.VMEM),
                   pl.BlockSpec(memory_space=pltpu.MemorySpace.VMEM)),
        compiler_params=pltpu.CompilerParams(vmem_limit_bytes=vmem),
    )(*ins)
    return out_pad, alpha_pad


# ----------------------------------------------------------------------------------
# Parameter construction (deterministic, synthetic) + host-side fusion/padding
# ----------------------------------------------------------------------------------
def init_raw_block_params(key, in_ch, out_ch, heads, edge_dim):
    HC = heads * out_ch
    ks = jax.random.split(key, 12)

    def uni(k, shape):
        s = 1.0 / (float(shape[0]) ** 0.5)
        return jax.random.uniform(k, shape, jnp.float32, -s, s)

    return dict(
        wq=uni(ks[0], (in_ch, HC)), bq=0.01 * jax.random.normal(ks[1], (HC,), jnp.float32),
        wk=uni(ks[2], (in_ch, HC)), bk=0.01 * jax.random.normal(ks[3], (HC,), jnp.float32),
        wv=uni(ks[4], (in_ch, HC)), bv=0.01 * jax.random.normal(ks[5], (HC,), jnp.float32),
        we=uni(ks[6], (edge_dim, HC)),                                     # lin_edge: bias=False
        ws=uni(ks[7], (in_ch, HC)), bs=0.01 * jax.random.normal(ks[8], (HC,), jnp.float32),
        wbeta=uni(ks[9], (3 * HC, 1)),                                     # lin_beta: bias=False
        w1=uni(ks[10], (HC, out_ch)),
        b1=0.01 * jax.random.normal(ks[11], (out_ch,), jnp.float32),
        in_ch=in_ch, out_ch=out_ch, heads=heads, edge_dim=edge_dim)


def pack_branches(branches):
    """Fuse 1..n identical-shape blocks into one kernel weight set (heads concatenated)."""
    nb = len(branches)
    p0 = branches[0]
    in_ch, out_ch, heads, edge_dim = p0["in_ch"], p0["out_ch"], p0["heads"], p0["edge_dim"]
    HC = heads * out_ch
    HCt = nb * HC
    Ht = nb * heads
    f32, bf16 = jnp.float32, jnp.bfloat16

    def bcat(name):
        return jnp.concatenate([b[name] for b in branches], axis=-1)

    # fused Q|K|V|skip projection, zero-padded to a 128-row contraction dim (bf16 operands)
    w_qkvr = jnp.concatenate([bcat("wq"), bcat("wk"), bcat("wv"), bcat("ws")], axis=1)
    wqkvr = jnp.zeros((LANE, 4 * HCt), f32).at[:in_ch].set(w_qkvr).astype(bf16)
    bqkvr = jnp.concatenate([bcat("bq"), bcat("bk"), bcat("bv"), bcat("bs")])[None, :]    # f32

    # edge projection applied to both k and v columns: [128, 2*HCt]
    we_t = bcat("we")                                                   # [edge_dim, HCt]
    we2 = jnp.zeros((LANE, 2 * HCt), f32).at[:edge_dim].set(
        jnp.concatenate([we_t, we_t], axis=1)).astype(bf16)

    # folded lin_beta (b = agg@(wbo+wbd) + x_r@(wbr-wbd)), block-diagonal per branch
    wbeta = jnp.zeros((2 * HCt, nb), f32)
    for i, br in enumerate(branches):
        wbo, wbr, wbd = br["wbeta"][:HC, 0], br["wbeta"][HC:2 * HC, 0], br["wbeta"][2 * HC:, 0]
        wbeta = wbeta.at[i * HC:(i + 1) * HC, i].set(wbo + wbd)
        wbeta = wbeta.at[HCt + i * HC:HCt + (i + 1) * HC, i].set(wbr - wbd)
    wbeta = wbeta.astype(bf16)

    # transf1, block-diagonal AND pre-padded to lane-dense [HCt, nb*128] (zero cols free on MXU)
    w1 = jnp.zeros((HCt, nb * LANE), f32)
    b1 = jnp.zeros((1, nb * LANE), f32)
    for i, br in enumerate(branches):
        w1 = w1.at[i * HC:(i + 1) * HC, i * LANE:i * LANE + out_ch].set(br["w1"])
        b1 = b1.at[0, i * LANE:i * LANE + out_ch].set(br["b1"])
    w1 = w1.astype(bf16)

    # block-diagonal head reduce/expand matrix: R[c, h] = 1 iff c // out_ch == h
    head_of_col = jnp.arange(HCt) // out_ch
    R = (head_of_col[:, None] == jnp.arange(Ht)[None, :]).astype(bf16)   # [HCt, Ht]

    return (wqkvr, bqkvr, we2, wbeta, w1, b1, R)


# ----------------------------------------------------------------------------------
# EdgeTransformerEncoder_tcn forward
# ----------------------------------------------------------------------------------
def encoder_forward(x, edge_index, edge_attr, inter_layers, head_layer, heads):
    N = x.shape[0]
    src, dst = edge_index[0], edge_index[1]
    # one-hot gather/scatter operands in bf16 (0/1 exact; halves HBM/VMEM of [E,N])
    S = jax.nn.one_hot(src, N, dtype=jnp.bfloat16)   # [E, N]
    D = jax.nn.one_hot(dst, N, dtype=jnp.bfloat16)   # [E, N]

    def pad_lanes(a):
        a = a.astype(jnp.bfloat16)
        return jnp.pad(a, ((0, 0), (0, LANE - a.shape[1])))

    h = pad_lanes(x)
    ea = pad_lanes(edge_attr)

    # conv2 + conv_layers: bf16 inter-layer slabs; the alpha slab of layer n IS layer
    # n+1's edge_attr slab (already [E,128] with zero padding -> no host re-padding).
    for lyr in inter_layers:
        h, ea = grnformer_block(h, ea, S, D, lyr["packed"], heads=heads,
                                out_ch=lyr["out"], n_branch=1, out_dtype=jnp.bfloat16)

    # conv_mu + conv_logstd fused into ONE pallas_call (shared h/ea/S/D fetch), f32 outputs
    out2, alpha2 = grnformer_block(h, ea, S, D, head_layer["packed"], heads=heads,
                                   out_ch=head_layer["out"], n_branch=2,
                                   out_dtype=jnp.float32)
    oc = head_layer["out"]
    x_mu = out2[:, :oc]
    x_std = out2[:, LANE:LANE + oc]
    a_mu = alpha2[:, :heads]
    a_std = alpha2[:, heads:2 * heads]
    return x_mu, x_std, (edge_index, a_mu), (edge_index, a_std)


if __name__ == "__main__":
    # Module hyper-params (small, consistent with the PyTorch __init__)
    in_channels, out_channels, num_head, edge_dim, num_layers = 8, 8, 2, 4, 3
    N, E = 16, 32

    key = jax.random.PRNGKey(0)
    kx, kei, kea, kp = jax.random.split(key, 4)
    x = jax.random.normal(kx, (N, in_channels), jnp.float32)
    edge_index = jax.random.randint(kei, (2, E), 0, N)            # [2, E] (src; dst)
    edge_attr = jax.random.normal(kea, (E, edge_dim), jnp.float32)

    # Layer configs mirroring EdgeTransformerEncoder_tcn.__init__
    inter_cfgs = [(in_channels, num_layers * out_channels, edge_dim)]          # conv2
    for i in range(num_layers, 2, -1):                                          # conv_layers
        inter_cfgs.append((i * out_channels, (i - 1) * out_channels, num_head))
    head_cfg = (2 * out_channels, out_channels, num_head)                       # conv_mu / conv_logstd

    pkeys = jax.random.split(kp, len(inter_cfgs) + 2)
    inter_layers = []
    for (ic, oc, ed), k in zip(inter_cfgs, pkeys[:len(inter_cfgs)]):
        raw = init_raw_block_params(k, ic, oc, num_head, ed)
        inter_layers.append({"out": oc, "packed": pack_branches([raw])})
    raw_mu = init_raw_block_params(pkeys[-2], head_cfg[0], head_cfg[1], num_head, head_cfg[2])
    raw_std = init_raw_block_params(pkeys[-1], head_cfg[0], head_cfg[1], num_head, head_cfg[2])
    head_layer = {"out": head_cfg[1], "packed": pack_branches([raw_mu, raw_std])}

    x_mu, x_std, (ei_mu, a_mu), (ei_std, a_std) = encoder_forward(
        x, edge_index, edge_attr, inter_layers, head_layer, num_head)
    jax.block_until_ready((x_mu, x_std, a_mu, a_std))

    assert x_mu.shape == (N, out_channels) and x_std.shape == (N, out_channels)
    assert a_mu.shape == (E, num_head) and a_std.shape == (E, num_head)
    for arr in (x_mu, x_std, a_mu, a_std):
        assert bool(jnp.all(jnp.isfinite(arr)))
    # softmax sanity: attention weights of each destination's incoming edges sum to ~1
    seg = jax.ops.segment_sum(a_mu.astype(jnp.float32), edge_index[1], num_segments=N)
    has_edge = jax.ops.segment_sum(jnp.ones((E,), jnp.float32), edge_index[1],
                                   num_segments=N) > 0
    err = jnp.abs(jnp.where(has_edge[:, None], seg - 1.0, 0.0)).max()
    assert float(err) < 0.1, float(err)
    print("KERNEL_OK")
</pallas_src>

<mosaic_0001>
module attributes {stable_mosaic.version = 11 : i64} {
  func.func @grnformer_block_kernel(%arg0: memref<16x128xbf16, #tpu.memory_space<vmem>>, %arg1: memref<32x128xbf16, #tpu.memory_space<vmem>>, %arg2: memref<32x16xbf16, #tpu.memory_space<vmem>>, %arg3: memref<32x16xbf16, #tpu.memory_space<vmem>>, %arg4: memref<128x192xbf16, #tpu.memory_space<vmem>>, %arg5: memref<1x192xf32, #tpu.memory_space<vmem>>, %arg6: memref<128x96xbf16, #tpu.memory_space<vmem>>, %arg7: memref<96x1xbf16, #tpu.memory_space<vmem>>, %arg8: memref<48x128xbf16, #tpu.memory_space<vmem>>, %arg9: memref<1x128xf32, #tpu.memory_space<vmem>>, %arg10: memref<48x2xbf16, #tpu.memory_space<vmem>>, %arg11: memref<16x128xbf16, #tpu.memory_space<vmem>>, %arg12: memref<32x128xbf16, #tpu.memory_space<vmem>>) attributes {dimension_semantics = [], scalar_prefetch = 0 : i64, scratch_operands = 0 : i64, tpu.core_type = #tpu.core_type<tc>} {
    %c0 = arith.constant 0 : index
    %c0_0 = arith.constant 0 : index
    %0 = vector.load %arg0[%c0, %c0_0] : memref<16x128xbf16, #tpu.memory_space<vmem>>, vector<16x128xbf16>
    %c0_1 = arith.constant 0 : index
    %c0_2 = arith.constant 0 : index
    %1 = vector.load %arg1[%c0_1, %c0_2] : memref<32x128xbf16, #tpu.memory_space<vmem>>, vector<32x128xbf16>
    %c0_3 = arith.constant 0 : index
    %c0_4 = arith.constant 0 : index
    %2 = vector.load %arg2[%c0_3, %c0_4] : memref<32x16xbf16, #tpu.memory_space<vmem>>, vector<32x16xbf16>
    %c0_5 = arith.constant 0 : index
    %c0_6 = arith.constant 0 : index
    %3 = vector.load %arg3[%c0_5, %c0_6] : memref<32x16xbf16, #tpu.memory_space<vmem>>, vector<32x16xbf16>
    %c0_7 = arith.constant 0 : index
    %c0_8 = arith.constant 0 : index
    %4 = vector.load %arg10[%c0_7, %c0_8] : memref<48x2xbf16, #tpu.memory_space<vmem>>, vector<48x2xbf16>
    %c0_9 = arith.constant 0 : index
    %c0_10 = arith.constant 0 : index
    %5 = vector.load %arg4[%c0_9, %c0_10] : memref<128x192xbf16, #tpu.memory_space<vmem>>, vector<128x192xbf16>
    %cst = arith.constant dense<0.000000e+00> : vector<16x192xf32>
    %6 = tpu.matmul %0, %5, %cst {dimension_numbers = #tpu.dot_dimension_numbers<[1], [0], [0], [1], [0, 0, 1, 1], [], []>} : vector<16x128xbf16>, vector<128x192xbf16>, vector<16x192xf32> -> vector<16x192xf32>
    %c0_11 = arith.constant 0 : index
    %c0_12 = arith.constant 0 : index
    %7 = vector.load %arg5[%c0_11, %c0_12] : memref<1x192xf32, #tpu.memory_space<vmem>>, vector<1x192xf32>
    %8 = vector.broadcast %7 : vector<1x192xf32> to vector<16x192xf32>
    %9 = arith.addf %6, %8 : vector<16x192xf32>
    %10 = vector.extract_strided_slice %9 {offsets = [0, 0], sizes = [16, 48], strides = [1, 1]} : vector<16x192xf32> to vector<16x48xf32>
    %11 = vector.extract_strided_slice %9 {offsets = [0, 48], sizes = [16, 96], strides = [1, 1]} : vector<16x192xf32> to vector<16x96xf32>
    %12 = vector.extract_strided_slice %9 {offsets = [0, 144], sizes = [16, 48], strides = [1, 1]} : vector<16x192xf32> to vector<16x48xf32>
    %13 = arith.truncf %10 : vector<16x48xf32> to vector<16x48xbf16>
    %cst_13 = arith.constant dense<0.000000e+00> : vector<32x48xf32>
    %14 = tpu.matmul %3, %13, %cst_13 {dimension_numbers = #tpu.dot_dimension_numbers<[1], [0], [0], [1], [0, 0, 1, 1], [], []>} : vector<32x16xbf16>, vector<16x48xbf16>, vector<32x48xf32> -> vector<32x48xf32>
    %15 = tpu.concatenate %2, %1 in 1 : vector<32x16xbf16>, vector<32x128xbf16> -> vector<32x144xbf16>
    %16 = arith.truncf %11 : vector<16x96xf32> to vector<16x96xbf16>
    %c0_14 = arith.constant 0 : index
    %c0_15 = arith.constant 0 : index
    %17 = vector.load %arg6[%c0_14, %c0_15] : memref<128x96xbf16, #tpu.memory_space<vmem>>, vector<128x96xbf16>
    %18 = tpu.concatenate %16, %17 in 0 : vector<16x96xbf16>, vector<128x96xbf16> -> vector<144x96xbf16>
    %cst_16 = arith.constant dense<0.000000e+00> : vector<32x96xf32>
    %19 = tpu.matmul %15, %18, %cst_16 {dimension_numbers = #tpu.dot_dimension_numbers<[1], [0], [0], [1], [0, 0, 1, 1], [], []>} : vector<32x144xbf16>, vector<144x96xbf16>, vector<32x96xf32> -> vector<32x96xf32>
    %20 = vector.extract_strided_slice %19 {offsets = [0, 0], sizes = [32, 48], strides = [1, 1]} : vector<32x96xf32> to vector<32x48xf32>
    %21 = vector.extract_strided_slice %19 {offsets = [0, 48], sizes = [32, 48], strides = [1, 1]} : vector<32x96xf32> to vector<32x48xf32>
    %22 = arith.mulf %14, %20 : vector<32x48xf32>
    %23 = arith.truncf %22 : vector<32x48xf32> to vector<32x48xbf16>
    %cst_17 = arith.constant dense<0.000000e+00> : vector<32x2xf32>
    %24 = tpu.matmul %23, %4, %cst_17 {dimension_numbers = #tpu.dot_dimension_numbers<[1], [0], [0], [1], [0, 0, 1, 1], [], []>} : vector<32x48xbf16>, vector<48x2xbf16>, vector<32x2xf32> -> vector<32x2xf32>
    %cst_18 = arith.constant 0.204124153 : f32
    %25 = vector.broadcast %cst_18 : f32 to vector<32x2xf32>
    %26 = arith.mulf %24, %25 : vector<32x2xf32>
    %27 = arith.extf %3 : vector<32x16xbf16> to vector<32x16xf32>
    %cst_19 = arith.constant 1.000000e+00 : f32
    %28 = vector.broadcast %cst_19 : f32 to vector<32x16xf32>
    %29 = arith.subf %28, %27 : vector<32x16xf32>
    %cst_20 = arith.constant -1.000000e+30 : f32
    %30 = vector.broadcast %cst_20 : f32 to vector<32x16xf32>
    %31 = arith.mulf %29, %30 : vector<32x16xf32>
    %32 = vector.extract_strided_slice %26 {offsets = [0, 0], sizes = [32, 1], strides = [1, 1]} : vector<32x2xf32> to vector<32x1xf32>
    %33 = vector.broadcast %32 : vector<32x1xf32> to vector<32x16xf32>
    %34 = arith.addf %33, %31 : vector<32x16xf32>
    %cst_21 = arith.constant dense<0xFF800000> : vector<16xf32>
    %35 = vector.multi_reduction <maximumf>, %34, %cst_21 [0] : vector<32x16xf32> to vector<16xf32>
    %36 = vector.shape_cast %35 : vector<16xf32> to vector<1x16xf32>
    %37 = vector.extract_strided_slice %26 {offsets = [0, 1], sizes = [32, 1], strides = [1, 1]} : vector<32x2xf32> to vector<32x1xf32>
    %38 = vector.broadcast %37 : vector<32x1xf32> to vector<32x16xf32>
    %39 = arith.addf %38, %31 : vector<32x16xf32>
    %cst_22 = arith.constant dense<0xFF800000> : vector<16xf32>
    %40 = vector.multi_reduction <maximumf>, %39, %cst_22 [0] : vector<32x16xf32> to vector<16xf32>
    %41 = vector.shape_cast %40 : vector<16xf32> to vector<1x16xf32>
    %42 = tpu.concatenate %36, %41 in 0 : vector<1x16xf32>, vector<1x16xf32> -> vector<2x16xf32>
    %43 = arith.truncf %42 : vector<2x16xf32> to vector<2x16xbf16>
    %cst_23 = arith.constant dense<0.000000e+00> : vector<32x2xf32>
    %44 = tpu.matmul %3, %43, %cst_23 {dimension_numbers = #tpu.dot_dimension_numbers<[1], [1], [0], [0], [0, 0, 1, 0], [], []>} : vector<32x16xbf16>, vector<2x16xbf16>, vector<32x2xf32> -> vector<32x2xf32>
    %45 = arith.subf %26, %44 : vector<32x2xf32>
    %46 = math.exp %45 : vector<32x2xf32>
    %47 = arith.truncf %46 : vector<32x2xf32> to vector<32x2xbf16>
    %cst_24 = arith.constant dense<0.000000e+00> : vector<32x48xf32>
    %48 = tpu.matmul %47, %4, %cst_24 {dimension_numbers = #tpu.dot_dimension_numbers<[1], [1], [0], [0], [0, 0, 1, 0], [], []>} : vector<32x2xbf16>, vector<48x2xbf16>, vector<32x48xf32> -> vector<32x48xf32>
    %49 = arith.mulf %21, %48 : vector<32x48xf32>
    %50 = tpu.concatenate %49, %46 in 1 : vector<32x48xf32>, vector<32x2xf32> -> vector<32x50xf32>
    %51 = arith.truncf %50 : vector<32x50xf32> to vector<32x50xbf16>
    %cst_25 = arith.constant dense<0.000000e+00> : vector<16x50xf32>
    %52 = tpu.matmul %3, %51, %cst_25 {dimension_numbers = #tpu.dot_dimension_numbers<[0], [0], [1], [1], [0, 1, 1, 1], [], []>} : vector<32x16xbf16>, vector<32x50xbf16>, vector<16x50xf32> -> vector<16x50xf32>
    %53 = vector.extract_strided_slice %52 {offsets = [0, 0], sizes = [16, 48], strides = [1, 1]} : vector<16x50xf32> to vector<16x48xf32>
    %54 = vector.extract_strided_slice %52 {offsets = [0, 48], sizes = [16, 2], strides = [1, 1]} : vector<16x50xf32> to vector<16x2xf32>
    %cst_26 = arith.constant 0.000000e+00 : f32
    %55 = vector.broadcast %cst_26 : f32 to vector<16x2xf32>
    %56 = arith.cmpf ogt, %54, %55 : vector<16x2xf32>
    %cst_27 = arith.constant 1.000000e+00 : f32
    %57 = vector.broadcast %cst_27 : f32 to vector<16x2xf32>
    %58 = arith.select %56, %54, %57 : vector<16x2xi1>, vector<16x2xf32>
    %59 = tpu.reciprocal %58 {approx = true} : vector<16x2xf32> -> vector<16x2xf32>
    %60 = arith.truncf %59 : vector<16x2xf32> to vector<16x2xbf16>
    %cst_28 = arith.constant dense<0.000000e+00> : vector<16x48xf32>
    %61 = tpu.matmul %60, %4, %cst_28 {dimension_numbers = #tpu.dot_dimension_numbers<[1], [1], [0], [0], [0, 0, 1, 0], [], []>} : vector<16x2xbf16>, vector<48x2xbf16>, vector<16x48xf32> -> vector<16x48xf32>
    %62 = arith.mulf %53, %61 : vector<16x48xf32>
    %63 = arith.truncf %59 : vector<16x2xf32> to vector<16x2xbf16>
    %cst_29 = arith.constant dense<0.000000e+00> : vector<32x2xf32>
    %64 = tpu.matmul %3, %63, %cst_29 {dimension_numbers = #tpu.dot_dimension_numbers<[1], [0], [0], [1], [0, 0, 1, 1], [], []>} : vector<32x16xbf16>, vector<16x2xbf16>, vector<32x2xf32> -> vector<32x2xf32>
    %65 = arith.mulf %46, %64 : vector<32x2xf32>
    %66 = tpu.concatenate %62, %12 in 1 : vector<16x48xf32>, vector<16x48xf32> -> vector<16x96xf32>
    %67 = arith.truncf %66 : vector<16x96xf32> to vector<16x96xbf16>
    %c0_30 = arith.constant 0 : index
    %c0_31 = arith.constant 0 : index
    %68 = vector.load %arg7[%c0_30, %c0_31] : memref<96x1xbf16, #tpu.memory_space<vmem>>, vector<96x1xbf16>
    %cst_32 = arith.constant dense<0.000000e+00> : vector<16x1xf32>
    %69 = tpu.matmul %67, %68, %cst_32 {dimension_numbers = #tpu.dot_dimension_numbers<[1], [0], [0], [1], [0, 0, 1, 1], [], []>} : vector<16x96xbf16>, vector<96x1xbf16>, vector<16x1xf32> -> vector<16x1xf32>
    %cst_33 = arith.constant 0.000000e+00 : f32
    %70 = vector.broadcast %cst_33 : f32 to vector<16x1xf32>
    %71 = arith.subf %70, %69 : vector<16x1xf32>
    %72 = math.exp %71 : vector<16x1xf32>
    %cst_34 = arith.constant 1.000000e+00 : f32
    %73 = vector.broadcast %cst_34 : f32 to vector<16x1xf32>
    %74 = arith.addf %73, %72 : vector<16x1xf32>
    %cst_35 = arith.constant 1.000000e+00 : f32
    %75 = vector.broadcast %cst_35 : f32 to vector<16x1xf32>
    %76 = arith.divf %75, %74 : vector<16x1xf32>
    %77 = vector.broadcast %76 : vector<16x1xf32> to vector<16x48xf32>
    %78 = arith.mulf %77, %12 : vector<16x48xf32>
    %cst_36 = arith.constant 1.000000e+00 : f32
    %79 = vector.broadcast %cst_36 : f32 to vector<16x1xf32>
    %80 = arith.subf %79, %76 : vector<16x1xf32>
    %81 = vector.broadcast %80 : vector<16x1xf32> to vector<16x48xf32>
    %82 = arith.mulf %81, %62 : vector<16x48xf32>
    %83 = arith.addf %78, %82 : vector<16x48xf32>
    %84 = arith.truncf %83 : vector<16x48xf32> to vector<16x48xbf16>
    %c0_37 = arith.constant 0 : index
    %c0_38 = arith.constant 0 : index
    %85 = vector.load %arg8[%c0_37, %c0_38] : memref<48x128xbf16, #tpu.memory_space<vmem>>, vector<48x128xbf16>
    %cst_39 = arith.constant dense<0.000000e+00> : vector<16x128xf32>
    %86 = tpu.matmul %84, %85, %cst_39 {dimension_numbers = #tpu.dot_dimension_numbers<[1], [0], [0], [1], [0, 0, 1, 1], [], []>} : vector<16x48xbf16>, vector<48x128xbf16>, vector<16x128xf32> -> vector<16x128xf32>
    %c0_40 = arith.constant 0 : index
    %c0_41 = arith.constant 0 : index
    %87 = vector.load %arg9[%c0_40, %c0_41] : memref<1x128xf32, #tpu.memory_space<vmem>>, vector<1x128xf32>
    %88 = vector.broadcast %87 : vector<1x128xf32> to vector<16x128xf32>
    %89 = arith.addf %86, %88 : vector<16x128xf32>
    %cst_42 = arith.constant 0.000000e+00 : f32
    %90 = vector.broadcast %cst_42 : f32 to vector<16x128xf32>
    %91 = arith.cmpf oge, %89, %90 : vector<16x128xf32>
    %cst_43 = arith.constant 0.00999999977 : f32
    %92 = vector.broadcast %cst_43 : f32 to vector<16x128xf32>
    %93 = arith.mulf %92, %89 : vector<16x128xf32>
    %94 = arith.select %91, %89, %93 : vector<16x128xi1>, vector<16x128xf32>
    %95 = arith.truncf %94 : vector<16x128xf32> to vector<16x128xbf16>
    %c0_44 = arith.constant 0 : index
    %c0_45 = arith.constant 0 : index
    %96 = vector.load %arg11[%c0_44, %c0_45] : memref<16x128xbf16, #tpu.memory_space<vmem>>, vector<16x128xbf16>
    tpu.vector_store %arg11[%c0_44, %c0_45], %95 {strides = array<i32>} : memref<16x128xbf16, #tpu.memory_space<vmem>>, vector<16x128xbf16>,
    %cst_46 = arith.constant 0.000000e+00 : f32
    %97 = vector.broadcast %cst_46 : f32 to vector<32x126xf32>
    %98 = tpu.concatenate %65, %97 in 1 : vector<32x2xf32>, vector<32x126xf32> -> vector<32x128xf32>
    %99 = arith.truncf %98 : vector<32x128xf32> to vector<32x128xbf16>
    %c0_47 = arith.constant 0 : index
    %c0_48 = arith.constant 0 : index
    %100 = vector.load %arg12[%c0_47, %c0_48] : memref<32x128xbf16, #tpu.memory_space<vmem>>, vector<32x128xbf16>
    tpu.vector_store %arg12[%c0_47, %c0_48], %99 {strides = array<i32>} : memref<32x128xbf16, #tpu.memory_space<vmem>>, vector<32x128xbf16>,
    return
  }
}

</mosaic_0001>

<bundles_post_ra>
// kernel: tpu_custom_call.1
= control target key start
LH: loop header
LB: loop body
LE: loop exit
PB: predicated region body
PF: predicated region fallthrough
CT: control target
= control target key end

     0   :  { %18 = vsyncpa [#allocation3], 0  ;;  %v1686_v2 = vmov 0   ;;  %s1687_s27 = smov 48   ;;  %s2133_s0 = inlined_call_operand.vmem [shape: bf16[16,128], index: 0, kind: input, shape index: {}]   ;;  %s2134_s1 = inlined_call_operand.vmem [shape: bf16[32,128], index: 1, kind: input, shape index: {}]   ;;  %s2135_s2 = inlined_call_operand.vmem [shape: bf16[32,16], index: 2, kind: input, shape index: {}]   ;;  %s2136_s3 = inlined_call_operand.vmem [shape: bf16[32,16], index: 3, kind: input, shape index: {}]   ;;  %s2137_s4 = inlined_call_operand.vmem [shape: bf16[128,192], index: 4, kind: input, shape index: {}]   ;;  %s2138_s5 = inlined_call_operand.vmem [shape: f32[1,192], index: 5, kind: input, shape index: {}]   ;;  %s2139_s6 = inlined_call_operand.vmem [shape: bf16[128,96], index: 6, kind: input, shape index: {}]   ;;  %s2140_s7 = inlined_call_operand.vmem [shape: bf16[96,1], index: 7, kind: input, shape index: {}]   ;;  %s2141_s8 = inlined_call_operand.vmem [shape: bf16[48,128], index: 8, kind: input, shape index: {}]   ;;  %s2142_s9 = inlined_call_operand.vmem [shape: f32[1,128], index: 9, kind: input, shape index: {}]   ;;  %s2143_s10 = inlined_call_operand.vmem [shape: bf16[48,2], index: 10, kind: input, shape index: {}]   ;;  %s2144_s11 = inlined_call_operand.hbm [shape: bf16[16,128], index: 11, kind: output, shape index: {0}]   ;;  %s2145_s12 = inlined_call_operand.hbm [shape: bf16[32,128], index: 12, kind: output, shape index: {1}]  }
   0x1   :  { %v1569_v0 = vld [vmem:[%s2137_s4 + $0x74] ss:$8 sps:$4 sm:$0xff]   ;;  %v1571_v1 = vld [vmem:[%s2137_s4 + $0x70] ss:$8 sps:$4 sm:$0xff]   ;;  %209 = vmatprep.mubr.bf16.mxu0 %v1686_v2  ;;  %1536 = vset.pattern.permute.xlu1 %v1686_v2  ;;  %v1572_v3 = vld [vmem:[%s2137_s4 + $0x64] ss:$8 sps:$4 sm:$0xff]  }
   0x2   :  { %177 = vmatprep.subr.bf16.mxu0 %v1569_v0  ;;  %1537 = vset.pattern.permute.xlu0 %v1686_v2  ;;  %v1574_v4 = vld [vmem:[%s2137_s4 + $0x60] ss:$8 sps:$4 sm:$0xff]   ;;  %v1575_v5 = vld [vmem:[%s2137_s4 + $0x54] ss:$8 sps:$4 sm:$0xff]   ;;  %v1577_v6 = vld [vmem:[%s2137_s4 + $0x50] ss:$8 sps:$4 sm:$0xff]  }
   0x3   :  { %178 = vmatpush1.bf16.msra.mxu0 %v1571_v1  ;;  %v1578_v7 = vld [vmem:[%s2137_s4 + $0x44] ss:$8 sps:$4 sm:$0xff]   ;;  %v1580_v8 = vld [vmem:[%s2137_s4 + $0x40] ss:$8 sps:$4 sm:$0xff]   ;;  %v1581_v9 = vld [vmem:[%s2137_s4 + $0x34] ss:$8 sps:$4 sm:$0xff]  }
   0x4   :  { %179 = vmatprep.subr.bf16.mxu0 %v1572_v3  ;;  %v1594_v10 = vld [vmem:[%s2139_s6 + $0x30] sm:$0xff]   ;;  %v1595_v12 = vld [vmem:[%s2139_s6 + $0x28] sm:$0xff]   ;;  %v1596_v13 = vld [vmem:[%s2139_s6 + $0x20] sm:$0xff]  }
   0x5   :  { %v1583_v11 = vld [vmem:[%s2137_s4 + $0x30] ss:$8 sps:$4 sm:$0xff]   ;;  %388 = vrot.lane.b32.xlu0 %v1594_v10, %s1687_s27  ;;  %v1584_v14 = vld [vmem:[%s2137_s4 + $0x24] ss:$8 sps:$4 sm:$0xff]   ;;  %384 = vrot.lane.b32.xlu1 %v1596_v13, %s1687_s27 }
   0x6   :  { %v1597_v15 = vld [vmem:[%s2139_s6 + $0x18] sm:$0xff]   ;;  %v1586_v16 = vld [vmem:[%s2137_s4 + $0x20] ss:$8 sps:$4 sm:$0xff]   ;;  %v1598_v17 = vld [vmem:[%s2139_s6 + $0x10] sm:$0xff]  }
   0x7   :  { %180 = vmatpush1.bf16.msra.mxu0 %v1574_v4  ;;  %v1587_v18 = vld [vmem:[%s2137_s4 + $0x14] ss:$8 sps:$4 sm:$0xff]   ;;  %v1599_v19 = vld [vmem:[%s2139_s6 + $0x8] sm:$0xff]   ;;  %v1600_v20 = vld [vmem:[%s2139_s6] sm:$0xff]  }
   0x8   :  { %181 = vmatprep.subr.bf16.mxu0 %v1575_v5  ;;  %v1589_v21 = vld [vmem:[%s2137_s4 + $0x10] ss:$8 sps:$4 sm:$0xff]   ;;  %v1590_v22 = vld [vmem:[%s2137_s4 + $0x4] ss:$8 sps:$4 sm:$0xff]   ;;  %v1592_v24 = vld [vmem:[%s2137_s4] ss:$8 sps:$4 sm:$0xff]  }
   0x9   :  { %386 = vrot.lane.b32.xlu0 %v1595_v12, %s1687_s27  ;;  %382 = vrot.lane.b32.xlu1 %v1597_v15, %s1687_s27  ;;  %v1601_v23 = vld [vmem:[%s2139_s6 + $0x38] sm:$0xff]   ;;  %v1593_v25 = vld [vmem:[%s2133_s0] sm:$0xff]  }
   0xb   :  { %182 = vmatpush1.bf16.msra.mxu0 %v1577_v6 }
   0xc   :  { %183 = vmatprep.subr.bf16.mxu0 %v1578_v7 }
   0xd   :  { %380 = vrot.lane.b32.xlu0 %v1598_v17, %s1687_s27  ;;  %378 = vrot.lane.b32.xlu1 %v1599_v19, %s1687_s27 }
   0xf   :  { %184 = vmatpush1.bf16.msra.mxu0 %v1580_v8 }
  0x10   :  { %185 = vmatprep.subr.bf16.mxu0 %v1581_v9 }
  0x11   :  { %376 = vrot.lane.b32.xlu0 %v1600_v20, %s1687_s27  ;;  %390 = vrot.lane.b32.xlu1 %v1601_v23, %s1687_s27 }
  0x13   :  { %186 = vmatpush1.bf16.msra.mxu0 %v1583_v11 }
  0x14   :  { %187 = vmatprep.subr.bf16.mxu0 %v1584_v14 }
  0x17   :  { %188 = vmatpush1.bf16.msra.mxu0 %v1586_v16 }
  0x18   :  { %189 = vmatprep.subr.bf16.mxu0 %v1587_v18 }
  0x1b   :  { %190 = vmatpush1.bf16.msra.mxu0 %v1589_v21 }
  0x1c   :  { %191 = vmatprep.subr.bf16.mxu0 %v1590_v22 }
  0x1d   :  { %19 = vsyncpa [#allocation5], 0  ;;  %v1853_v26 = vld [vmem:[%s2136_s3] sm:$0xff]   ;;  %vm231_vm0 = vcmask 130048   ;;  %s1688_s4 = smov 80   ;;  %v81_v34 = vlaneseq  ;;  %v1870_v47 = vld [vmem:[%s2136_s3 + $0x8] sm:$0xff]  }
  0x1e   :  { %1439 = vmatprep.mubr.msk.bf16.mxu1 %vm231_vm0, %v1853_v26  ;;  %v79_v37 = vld [vmem:[%s2138_s5] sm:$0x3]  ;;  %v1603_v54 = vld [vmem:[%s2134_s1 + $0x8] sm:$0xff]   ;;  %s1689_s25 = smov 16   ;;  %vm414_vm1 = vcmask 654336   ;;  %v1913_v9 = vld [vmem:[%s2143_s10 + $0x10] sm:$0xff]  }
  0x1f   :  { %192 = vmatpush1.bf16.msra.mxu0 %v1592_v24  ;;  %v82_v35 = vshrl.u32 %v81_v34, 7  ;;  %v1602_v53 = vld [vmem:[%s2134_s1] sm:$0xff]   ;;  %v1607_v7 = vld [vmem:[%s2135_s2 + $0x8] sm:$0xff]   ;;  %vm502_vm2 = vcmask 392192   ;;  %vm644_vm3 = vcmask 1040384   ;;  %vm713_vm4 = vcmask 15360  }
  0x20   :  { %v1606_v1 = vld [vmem:[%s2135_s2] sm:$0xff]   ;;  %1443 = vmatprep.subr.bf16.mxu0 %v1913_v9  ;;  %v1920_v10 = vld [vmem:[%s2143_s10 + $0x8] sm:$0xff]   ;;  %vm1692_vm5 = vmmov 0   ;;  %vm854_vm6 = vcmask 261120   ;;  %vm1068_vm9 = vcmask 785408   ;;  %s1694_s29 = smov 112  }
  0x21   :  { %v83_v36 = vsub.s32 0, %v82_v35  ;;  %v87_v38 = vsub.s32 1, %v82_v35  ;;  %v1927_v11 = vld [vmem:[%s2143_s10] sm:$0xff]   ;;  %s1693_s10 = smov 32  }
  0x22   :  { %210 = vmatmul.mubr.bf16.vlgmr.msra.gmra.mxu0 %v1593_v25 }
  0x23   :  { %v84_v40 = vrot.slane %v79_v37, %v83_v36  ;;  %v88_v42 = vrot.slane %v79_v37, %v87_v38  ;;  %1444 = vmatpush3.bf16.msra.mxu0 %v1913_v9  ;;  %v1690_v37 = vmov 1  }
  0x24   :  { %1445 = vmatprep.subr.bf16.mxu0 %v1920_v10 }
  0x27   :  { %1446 = vmatpush3.bf16.msra.mxu0 %v1920_v10 }
  0x28   :  { %1447 = vmatprep.subr.bf16.mxu0 %v1927_v11 }
  0x2b   :  { %1448 = vmatpush3.bf16.msra.mxu0 %v1927_v11 }
  0x77   :  { %v389_v27 = vpop.permute.xlu0 %388  ;;  %v385_v28 = vpop.permute.xlu1 %384 }
  0x78   :  { %410 = vrot.lane.b32.xlu0 %v389_v27, %s1688_s4 }
  0x7b   :  { %v387_v29 = vpop.permute.xlu0 %386  ;;  %v383_v30 = vpop.permute.xlu1 %382 }
  0x7c   :  { %408 = vrot.lane.b32.xlu1 %v387_v29, %s1688_s4  ;;  %406 = vrot.lane.b32.xlu0 %v385_v28, %s1688_s4 }
  0x7f   :  { %v381_v31 = vpop.permute.xlu0 %380  ;;  %v379_v32 = vpop.permute.xlu1 %378 }
  0x80   :  { %404 = vrot.lane.b32.xlu1 %v383_v30, %s1688_s4  ;;  %402 = vrot.lane.b32.xlu0 %v381_v31, %s1688_s4 }
  0x83   :  { %v377_v33 = vpop.permute.xlu0 %376  ;;  %v391_v52 = vpop.permute.xlu1 %390 }
  0x84   :  { %400 = vrot.lane.b32.xlu1 %v379_v32, %s1688_s4  ;;  %398 = vrot.lane.b32.xlu0 %v377_v33, %s1688_s4 }
  0xe2   :  { %v211_v39 = vpop.f32.mrf.mxu0 }
  0xe3   :  { %v212_v44 = vadd.f32 %v211_v39, %v84_v40 }
  0xe4   :  { %v213_v41 = vpop.f32.mrf.mxu0 }
  0xe5   :  { %v1872_v48 = vadd.f32 %v213_v41, %v88_v42  ;;  %v564_v41 = vunpack.c.l.bf16 %v1870_v47 }
  0xe6   :  { %v215_v43 = vpop.f32.mrf.mxu0 }
  0xe7   :  { %v216_v45 = vadd.f32 %v215_v43, %v84_v40  ;;  %v565_v40 = vunpack.c.h.bf16 %v1870_v47 }
  0xe8   :  { %v217_v46 = vpop.f32.mrf.mxu0 }
  0xe9   :  { %v220_v49 = vpack.c.bf16 %v216_v45, %v212_v44  ;;  %v1874_v50 = vadd.f32 %v217_v46, %v88_v42  ;;  %v562_v42 = vunpack.c.l.bf16 %v1853_v26  ;;  %v569_v43 = vsub.f32 1.0, %v565_v40 }
  0xea   :  { %v411_v55 = vpop.permute.xlu0 %410  ;;  %v563_v44 = vunpack.c.h.bf16 %v1853_v26  ;;  %v568_v46 = vsub.f32 1.0, %v564_v41 }
  0xeb   :  { %394 = vrot.lane.b32.xlu1 %v220_v49, %s1688_s4  ;;  %1437 = vmatprep.subr.bf16.mxu1 %v220_v49  ;;  %v319_v51 = vpack.c.bf16 %v1874_v50, %v1872_v48 }
  0xec   :  { %1438 = vmatpush3.bf16.msra.mxu1 %v220_v49  ;;  %v566_v49 = vsub.f32 1.0, %v562_v42 }
  0xed   :  { %396 = vrot.lane.b32.xlu0 %v319_v51, %s1688_s4  ;;  %429 = vmatprep.subr.bf16.mxu1 %v1686_v2 }
  0xee   :  { %v409_v56 = vpop.permute.xlu1 %408  ;;  %v407_v57 = vpop.permute.xlu0 %406 }
  0xef   :  { %412 = vrot.lane.b32.xlu1 %v391_v52, %s1688_s4  ;;  %1440 = vmatmul.mubr.msk.bf16.vlgmr.msra.gmra.mxu1 %vm231_vm0, %v1870_v47  ;;  %v573_v52 = vmul.f32 -1e+30, %v569_v43 }
  0xf0   :  { %430 = vmatpush1.bf16.msra.mxu1 %v411_v55  ;;  %v570_v55 = vmul.f32 -1e+30, %v566_v49 }
  0xf1   :  { %307 = vrot.lane.b32.xlu0 %v1602_v53, %s1689_s25  ;;  %431 = vmatprep.subr.bf16.mxu1 %v1686_v2  ;;  %v567_v53 = vsub.f32 1.0, %v563_v44 }
  0xf2   :  { %v405_v58 = vpop.permute.xlu1 %404  ;;  %v403_v59 = vpop.permute.xlu0 %402 }
  0xf3   :  { %309 = vrot.lane.b32.xlu1 %v1603_v54, %s1689_s25  ;;  %v572_v54 = vmul.f32 -1e+30, %v568_v46 }
  0xf4   :  { %432 = vmatpush1.bf16.msra.mxu1 %v409_v56 }
  0xf5   :  { %433 = vmatprep.subr.bf16.mxu1 %v1686_v2 }
  0xf6   :  { %v401_v60 = vpop.permute.xlu1 %400  ;;  %v399_v61 = vpop.permute.xlu0 %398 }
  0xf8   :  { %434 = vmatpush1.bf16.msra.mxu1 %v407_v57 }
  0xf9   :  { %435 = vmatprep.subr.bf16.mxu1 %v1686_v2 }
  0xfc   :  { %436 = vmatpush1.bf16.msra.mxu1 %v405_v58 }
  0xfd   :  { %437 = vmatprep.subr.bf16.mxu1 %v1686_v2 }
 0x100   :  { %438 = vmatpush1.bf16.msra.mxu1 %v403_v59  ;;  %v571_v59 = vmul.f32 -1e+30, %v567_v53  ;;  %v1992_v53 = vsel %vm713_vm4, %v1920_v10, 0 }
 0x101   :  { %439 = vmatprep.subr.bf16.mxu1 %v1686_v2 }
 0x104   :  { %440 = vmatpush1.bf16.msra.mxu1 %v401_v60 }
 0x105   :  { %441 = vmatprep.subr.bf16.mxu1 %v1686_v2 }
 0x108   :  { %442 = vmatpush1.bf16.msra.mxu1 %v399_v61 }
 0x109   :  { %443 = vmatprep.subr.bf16.mxu1 %v1686_v2 }
 0x15d   :  { %v395_v62 = vpop.permute.xlu1 %394 }
 0x15f   :  { %v397_v63 = vpop.permute.xlu0 %396 }
 0x160   :  { %v415_v0 = vsel %vm414_vm1, %v395_v62, %v397_v63 }
 0x161   :  { %444 = vmatpush1.bf16.msra.mxu1 %v415_v0  ;;  %v413_v3 = vpop.permute.xlu1 %412 }
 0x162   :  { %459 = vmatprep.subr.bf16.mxu1 %v1686_v2 }
 0x163   :  { %v308_v4 = vpop.permute.xlu0 %307 }
 0x164   :  { %1345 = vmatprep.mubr.msk.bf16.mxu1 %vm231_vm0, %v308_v4  ;;  %v313_v5 = vsel %vm231_vm0, %v1606_v1, %v308_v4 }
 0x165   :  { %460 = vmatpush2.bf16.msra.mxu1 %v413_v3  ;;  %v310_v6 = vpop.permute.xlu1 %309 }
 0x166   :  { %v317_v8 = vsel %vm231_vm0, %v1607_v7, %v310_v6  ;;  %1520 = vmatprep.subr.msk.bf16.mxu1 %vm713_vm4, %v1913_v9 }
 0x168   :  { %462 = vmatmul.mubr.bf16.vlgmr.msra.gmra.mxu1 %v313_v5 }
 0x169   :  { %1346 = vmatprep.mubr.msk.bf16.mxu1 %vm231_vm0, %v310_v6 }
 0x170   :  { %470 = vmatmul.mubr.bf16.gmra.mxu1 %v317_v8 }
 0x1af   :  { %v1441_v12 = vpop.f32.mrf.mxu1 }
 0x1b1   :  { %v272_v13 = vpop.f32.mrf.mxu1 }
 0x1b3   :  { %v1442_v14 = vpop.f32.mrf.mxu1 }
 0x1b5   :  { %v275_v15 = vpop.f32.mrf.mxu1 }
 0x228   :  { %v1931_v16 = vpop.f32.mrf.mxu1 }
 0x229   :  { %v478_v19 = vmul.f32 %v1931_v16, %v272_v13 }
 0x22a   :  { %v465_v17 = vpop.f32.mrf.mxu1 }
 0x22c   :  { %v1933_v18 = vpop.f32.mrf.mxu1 }
 0x22d   :  { %v479_v20 = vmul.f32 %v1933_v18, %v275_v15 }
 0x22e   :  { %v468_v21 = vpop.f32.mrf.mxu1 }
 0x22f   :  { %v482_v22 = vpack.c.bf16 %v479_v20, %v478_v19 }
 0x230   :  { %v1937_v23 = vpop.f32.mrf.mxu1 }
 0x231   :  { %1449 = vmatprep.mubr.msk.bf16.mxu0 %vm502_vm2, %v482_v22  ;;  %v480_v27 = vmul.f32 %v1441_v12, %v1937_v23 }
 0x232   :  { %v473_v24 = vpop.f32.mrf.mxu1 }
 0x234   :  { %v1940_v25 = vpop.f32.mrf.mxu1 }
 0x235   :  { %v481_v28 = vmul.f32 %v1442_v14, %v1940_v25 }
 0x236   :  { %v476_v29 = vpop.f32.mrf.mxu1 }
 0x237   :  { %v483_v30 = vpack.c.bf16 %v481_v28, %v480_v27 }
 0x239   :  { %1450 = vmatmul.mubr.msk.bf16.vlgmr.msra.gmra.mxu0 %vm502_vm2, %v483_v30 }
 0x23a   :  { %1455 = vmatprep.mubr.msk.bf16.mxu0 %vm231_vm0, %v1853_v26 }
 0x2f9   :  { %v1451_v31 = vpop.f32.mrf.mxu0 }
 0x2fa   :  { %v1947_v32 = vmul.f32 0.20412415, %v1451_v31 }
 0x2fb   :  { %v543_v33 = vpop.f32.mrf.mxu0 }
 0x2fc   :  { %v1949_v34 = vmul.f32 0.20412415, %v543_v33  ;;  %586 = vperm.xlu1 %1536, %v1947_v32  }
 0x2fd   :  { %v1452_v35 = vpop.f32.mrf.mxu0 }
 0x2fe   :  { %576 = vperm.xlu0 %1537, %v1949_v34   ;;  %v1953_v36 = vmul.f32 0.20412415, %v1452_v35 }
 0x2ff   :  { %v546_v38 = vpop.f32.mrf.mxu0 }
 0x300   :  { %1538 = vset.pattern.permute.xlu1 %v1690_v37  ;;  %v1957_v39 = vmul.f32 0.20412415, %v546_v38 }
 0x301   :  { %612 = vperm.xlu1 %1538, %v1949_v34  }
 0x302   :  { %591 = vperm.xlu0 %1537, %v1953_v36  }
 0x305   :  { %1539 = vset.pattern.permute.xlu1 %v1686_v2 }
 0x306   :  { %1540 = vset.pattern.permute.xlu0 %v1690_v37  ;;  %581 = vperm.xlu1 %1539, %v1957_v39  }
 0x307   :  { %616 = vperm.xlu0 %1540, %v1957_v39  }
 0x30a   :  { %1541 = vset.pattern.permute.xlu1 %v1690_v37 }
 0x30b   :  { %620 = vperm.xlu1 %1541, %v1947_v32  }
 0x30f   :  { %624 = vperm.xlu1 %1541, %v1953_v36  }
 0x313   :  { %1567 = vset.pattern.permute.xlu1 %v1686_v2 }
 0x377   :  { %v587_v45 = vpop.permute.xlu1 %586 }
 0x378   :  { %v596_v60 = vadd.f32 %v587_v45, %v572_v54 }
 0x379   :  { %v577_v51 = vpop.permute.xlu0 %576 }
 0x37a   :  { %v594_v61 = vadd.f32 %v577_v51, %v570_v55  ;;  %v600_v1 = vsel %vm231_vm0, %v596_v60, -inf }
 0x37c   :  { %v613_v56 = vpop.permute.xlu1 %612  ;;  %v598_v3 = vsel %vm231_vm0, %v594_v61, -inf }
 0x37d   :  { %v592_v57 = vpop.permute.xlu0 %591  ;;  %v627_v14 = vadd.f32 %v613_v56, %v570_v55 }
 0x37e   :  { %v597_v58 = vadd.f32 %v592_v57, %v573_v52 }
 0x37f   :  { %v631_v24 = vsel %vm231_vm0, %v627_v14, -inf }
 0x380   :  { %v601_v63 = vsel %vm231_vm0, %v597_v58, -inf }
 0x381   :  { %v582_v62 = vpop.permute.xlu1 %581  ;;  %v603_v6 = vmax.f32 %v600_v1, %v601_v63 }
 0x382   :  { %v595_v0 = vadd.f32 %v582_v62, %v571_v59  ;;  %v617_v5 = vpop.permute.xlu0 %616 }
 0x383   :  { %v628_v13 = vadd.f32 %v617_v5, %v571_v59 }
 0x384   :  { %v599_v4 = vsel %vm231_vm0, %v595_v0, -inf }
 0x385   :  { %v602_v7 = vmax.f32 %v598_v3, %v599_v4  ;;  %v632_v20 = vsel %vm231_vm0, %v628_v13, -inf  ;;  %v1691_v13 = vmov 0.0  }
 0x386   :  { %v621_v8 = vpop.permute.xlu1 %620  ;;  %v635_v29 = vmax.f32 %v631_v24, %v632_v20 }
 0x387   :  { %v604_v12 = vmax.f32 %v602_v7, %v603_v6  ;;  %v629_v17 = vadd.f32 %v621_v8, %v572_v54  ;;  %v1999_v54 = vsel %vm713_vm4, %v1927_v11, 0 }
 0x389   :  { %v605_v15 = vrot.slane %v604_v12, 4  ;;  %v633_v27 = vsel %vm231_vm0, %v629_v17, -inf }
 0x38a   :  { %v625_v19 = vpop.permute.xlu1 %624 }
 0x38b   :  { %v630_v21 = vadd.f32 %v625_v19, %v573_v52  ;;  %v606_v22 = vmax.f32 %v604_v12, %v605_v15  ;;  %v1985_v52 = vsel %vm713_vm4, %v1913_v9, 0 }
 0x38c   :  { %1460 = vmatpush3.bf16.xpose.msra.mxu1 %v1985_v52 }
 0x38d   :  { %v634_v28 = vsel %vm231_vm0, %v630_v21, -inf  ;;  %v607_v31 = vrot.slane %v606_v22, 2  ;;  %1521 = vmatprep.subr.msk.bf16.mxu1 %vm713_vm4, %v1920_v10 }
 0x38e   :  { %v636_v30 = vmax.f32 %v633_v27, %v634_v28 }
 0x38f   :  { %v608_v37 = vmax.f32 %v606_v22, %v607_v31 }
 0x390   :  { %v637_v33 = vmax.f32 %v635_v29, %v636_v30 }
 0x391   :  { %v609_v41 = vrot.slane %v608_v37, 1 }
 0x392   :  { %v638_v35 = vrot.slane %v637_v33, 4 }
 0x393   :  { %v610_v44 = vmax.f32 %v608_v37, %v609_v41 }
 0x394   :  { %v639_v38 = vmax.f32 %v637_v33, %v638_v35  ;;  %1462 = vmatpush3.bf16.xpose.msra.mxu1 %v1992_v53 }
 0x395   :  { %1522 = vmatprep.subr.msk.bf16.mxu1 %vm713_vm4, %v1927_v11 }
 0x396   :  { %v640_v40 = vrot.slane %v639_v38, 2 }
 0x398   :  { %v641_v42 = vmax.f32 %v639_v38, %v640_v40 }
 0x39a   :  { %v642_v43 = vrot.slane %v641_v42, 1 }
 0x39c   :  { %v643_v45 = vmax.f32 %v641_v42, %v642_v43  ;;  %1464 = vmatpush3.bf16.xpose.msra.mxu1 %v1999_v54 }
 0x39e   :  { %v645_v46 = vsel %vm644_vm3, %v610_v44, %v643_v45 }
 0x39f   :  { %v646_v49 = vpack.c.bf16 %v645_v46, %v645_v46 }
 0x3a1   :  { %1519 = vmatprep.subr.msk.bf16.mxu0 %vm231_vm0, %v646_v49  ;;  %v648_v51 = vsel %vm231_vm0, %v646_v49, 0 }
 0x3a2   :  { %1454 = vmatpush3.bf16.xpose.msra.mxu0 %v648_v51 }
 0x3a3   :  { %1469 = vmatprep.subr.bf16.mxu0 %v1691_v13 }
 0x3a9   :  { %1456 = vmatmul.mubr.msk.bf16.vlgmr.msra.gmra.mxu0 %vm231_vm0, %v1870_v47 }
 0x3aa   :  { %1473 = vmatprep.mubr.msk.bf16.mxu0 %vm1692_vm5, %v1691_v13 }
 0x469   :  { %v1457_v9 = vpop.f32.mrf.mxu0 }
 0x46a   :  { %v701_v57 = vsub.f32 %v1947_v32, %v1457_v9 }
 0x46b   :  { %v684_v55 = vpop.f32.mrf.mxu0 }
 0x46c   :  { %v699_v56 = vsub.f32 %v1949_v34, %v684_v55  ;;  %v707_v63 = vmul.f32 1.442695, %v701_v57 }
 0x46d   :  { %v1458_v58 = vpop.f32.mrf.mxu0 }
 0x46e   :  { %v703_v10 = vmul.f32 1.442695, %v699_v56  ;;  %v702_v59 = vsub.f32 %v1953_v36, %v1458_v58  ;;  %v1611_v58 = vld [vmem:[%s2140_s7 + $0x28] sm:$0xff]  }
 0x46f   :  { %v687_v60 = vpop.f32.mrf.mxu0 }
 0x470   :  { %v709_v61 = vmul.f32 1.442695, %v702_v59  ;;  %v700_v62 = vsub.f32 %v1957_v39, %v687_v60  ;;  %1622 = vpow2.f32 %v703_v10  ;;  %v1612_v10 = vld [vmem:[%s2140_s7 + $0x20] sm:$0xff]   ;;  %v1613_v59 = vld [vmem:[%s2140_s7 + $0x18] sm:$0xff]   ;;  %v1615_v60 = vld [vmem:[%s2140_s7 + $0x8] sm:$0xff]  }
 0x472   :  { %v705_v11 = vmul.f32 1.442695, %v700_v62  ;;  %1624 = vpow2.f32 %v709_v61  ;;  %v1616_v61 = vld [vmem:[%s2140_s7] sm:$0xff]  }
 0x474   :  { %1626 = vpow2.f32 %v705_v11 }
 0x475   :  { %1628 = vpow2.f32 %v707_v63 }
 0x47d   :  { %v2006_v0 = vpop.eup %1622 }
 0x47f   :  { %v2008_v1 = vpop.eup %1624 }
 0x481   :  { %v2010_v34 = vpop.eup %1626 }
 0x482   :  { %v2012_v32 = vpop.eup %1628  ;;  %v711_v36 = vpack.c.bf16 %v2010_v34, %v2006_v0  ;;  %v1547_v8 = vpack.i.bf16 %v2010_v34, %v2006_v0 }
 0x483   :  { %v712_v39 = vpack.c.bf16 %v2008_v1, %v2012_v32  ;;  %v1542_v7 = vpack.i.bf16 %v2008_v1, %v2012_v32 }
 0x484   :  { %1465 = vmatprep.mubr.msk.bf16.mxu1 %vm713_vm4, %v711_v36 }
 0x485   :  { %1466 = vmatmul.mubr.msk.bf16.vlgmr.msra.gmra.mxu1 %vm713_vm4, %v712_v39 }
 0x486   :  { %1489 = vmatprep.mubr.msk.bf16.mxu1 %vm231_vm0, %v1853_v26 }
 0x545   :  { %v1467_v3 = vpop.f32.mrf.mxu1 }
 0x546   :  { %786 = vrot.lane.b32.xlu0 %v1467_v3, %s1687_s27 }
 0x547   :  { %v763_v4 = vpop.f32.mrf.mxu1 }
 0x549   :  { %v1468_v5 = vpop.f32.mrf.mxu1 }
 0x54a   :  { %782 = vrot.lane.b32.xlu0 %v763_v4, %s1687_s27  ;;  %788 = vrot.lane.b32.xlu1 %v1468_v5, %s1687_s27 }
 0x54b   :  { %v766_v6 = vpop.f32.mrf.mxu1 }
 0x54e   :  { %784 = vrot.lane.b32.xlu1 %v766_v6, %s1687_s27 }
 0x552   :  { %1543 = vrot.lane.b32.xlu1 %v1542_v7, %s1687_s27 }
 0x556   :  { %1548 = vrot.lane.b32.xlu1 %v1547_v8, %s1687_s27 }
 0x5b8   :  { %v787_v12 = vpop.permute.xlu0 %786 }
 0x5b9   :  { %v796_v15 = vmul.f32 %v787_v12, %v1937_v23 }
 0x5bc   :  { %v789_v14 = vpop.permute.xlu1 %788  ;;  %v783_v19 = vpop.permute.xlu0 %782 }
 0x5bd   :  { %v797_v17 = vmul.f32 %v789_v14, %v1940_v25  ;;  %v794_v22 = vmul.f32 %v783_v19, %v1931_v16 }
 0x5bf   :  { %v1552_v20 = vpack.i.bf16 %v797_v17, %v796_v15 }
 0x5c0   :  { %v785_v21 = vpop.permute.xlu1 %784 }
 0x5c1   :  { %v795_v24 = vmul.f32 %v785_v21, %v1933_v18  ;;  %1553 = vrot.lane.b32.xlu0 %v1552_v20, %s1688_s4 }
 0x5c3   :  { %v1557_v27 = vpack.i.bf16 %v795_v24, %v794_v22 }
 0x5c4   :  { %v1544_v23 = vpop.permute.xlu1 %1543 }
 0x5c5   :  { %1558 = vrot.lane.b32.xlu0 %v1557_v27, %s1688_s4  ;;  %v1546_v28 = vunpack.i.h.bf16 %v1544_v23  ;;  %v1545_v29 = vunpack.i.l.bf16 %v1544_v23 }
 0x5c8   :  { %v1549_v16 = vpop.permute.xlu1 %1548 }
 0x5c9   :  { %v1551_v38 = vunpack.i.h.bf16 %v1549_v16  ;;  %v1550_v40 = vunpack.i.l.bf16 %v1549_v16 }
 0x5e3   :  { %838 = vxpose.xlu0.c.b16.start [1/2] (short) (narrow) %v1853_v26, 16 }
 0x5e7   :  { %839 = vxpose.xlu0.c.b16.end [2/2] (short) (narrow) %v1870_v47, 16 }
 0x5f0   :  { %1568 = vset.pattern.permute.xlu0 %v1686_v2 }
 0x633   :  { %v1554_v25 = vpop.permute.xlu0 %1553 }
 0x634   :  { %v1556_v30 = vunpack.i.h.bf16 %v1554_v25  ;;  %v1555_v31 = vunpack.i.l.bf16 %v1554_v25 }
 0x636   :  { %v832_v18 = vsel %vm502_vm2, %v1555_v31, %v1545_v29  ;;  %v833_v33 = vsel %vm502_vm2, %v1556_v30, %v1546_v28 }
 0x637   :  { %v835_v35 = vpack.c.bf16 %v833_v33, %v832_v18  ;;  %v1559_v37 = vpop.permute.xlu0 %1558 }
 0x638   :  { %v1561_v26 = vunpack.i.h.bf16 %v1559_v37  ;;  %v1560_v41 = vunpack.i.l.bf16 %v1559_v37 }
 0x639   :  { %1470 = vmatpush3.bf16.msra.mxu0 %v835_v35 }
 0x63a   :  { %v830_v2 = vsel %vm502_vm2, %v1560_v41, %v1550_v40  ;;  %v831_v42 = vsel %vm502_vm2, %v1561_v26, %v1551_v38  ;;  %1471 = vmatprep.subr.bf16.mxu0 %v1691_v13 }
 0x63b   :  { %v834_v43 = vpack.c.bf16 %v831_v42, %v830_v2 }
 0x63d   :  { %1472 = vmatpush3.bf16.msra.mxu0 %v834_v43  ;;  %v1617_v43 = vld [vmem:[%s2141_s8 + $0x10] sm:$0xff]  }
 0x63e   :  { %1477 = vmatprep.subr.bf16.mxu0 %v1691_v13 }
 0x645   :  { %v846_v44 = vpop.trf.xlu0 }
 0x646   :  { %1474 = vmatmul.mubr.msk.bf16.vlgmr.msra.gmra.mxu0 %vm854_vm6, %v846_v44 }
 0x647   :  { %1478 = vmatpush3.bf16.xpose.msra.mxu0 %v1985_v52  ;;  %1483 = vmatprep.mubr.msk.bf16.mxu0 %vm1692_vm5, %v1691_v13 }
 0x648   :  { %1479 = vmatprep.subr.bf16.mxu0 %v1691_v13 }
 0x64f   :  { %1480 = vmatpush3.bf16.xpose.msra.mxu0 %v1992_v53  ;;  %v1562_v53 = vpack.i.bf16 %v1874_v50, %v1872_v48 }
 0x650   :  { %1481 = vmatprep.subr.bf16.mxu0 %v1691_v13 }
 0x657   :  { %1482 = vmatpush3.bf16.xpose.msra.mxu0 %v1999_v54 }
 0x658   :  { %1509 = vmatprep.subr.bf16.mxu0 %v1691_v13 }
 0x706   :  { %v892_v45 = vpop.f32.mrf.mxu0 }
 0x707   :  { %vm899_vm7 = vcmp.gt.f32.partialorder %v892_v45, 0.0 }
 0x708   :  { %v1475_v46 = vpop.f32.mrf.mxu0  ;;  %v901_v49 = vsel %vm899_vm7, %v892_v45, 1.0 }
 0x709   :  { %1630 = vrcp.f32 %v901_v49 }
 0x70a   :  { %v895_v51 = vpop.f32.mrf.mxu0 }
 0x70b   :  { %vm900_vm8 = vcmp.gt.f32.partialorder %v895_v51, 0.0 }
 0x70c   :  { %v902_v52 = vsel %vm900_vm8, %v895_v51, 1.0  ;;  %v1476_v9 = vpop.f32.mrf.mxu0 }
 0x70d   :  { %1632 = vrcp.f32 %v902_v52 }
 0x716   :  { %v1631_v55 = vpop.eup %1630 }
 0x71a   :  { %v1633_v56 = vpop.eup %1632 }
 0x71b   :  { %v905_v57 = vpack.c.bf16 %v1633_v56, %v1631_v55 }
 0x71d   :  { %907 = vrot.lane.b32.xlu1 %v905_v57, %s1688_s4 }
 0x721   :  { %1563 = vrot.lane.b32.xlu1 %v1562_v53, %s1693_s10 }
 0x78f   :  { %v908_v54 = vpop.permute.xlu1 %907 }
 0x790   :  { %1484 = vmatmul.mubr.msk.bf16.vlgmr.msra.gmra.mxu0 %vm713_vm4, %v908_v54  ;;  %1487 = vmatprep.subr.bf16.mxu1 %v908_v54 }
 0x791   :  { %1488 = vmatpush3.bf16.msra.mxu1 %v908_v54  ;;  %1515 = vmatprep.mubr.msk.bf16.mxu0 %vm1692_vm5, %v1691_v13 }
 0x792   :  { %1493 = vmatprep.subr.bf16.mxu1 %v1691_v13  ;;  %1510 = vmatpush3.bf16.msra.mxu0 %v1617_v43 }
 0x793   :  { %v1564_v63 = vpop.permute.xlu1 %1563  ;;  %1511 = vmatprep.subr.bf16.mxu0 %v1691_v13 }
 0x794   :  { %1490 = vmatmul.mubr.msk.bf16.vlgmr.msra.gmra.mxu1 %vm231_vm0, %v1870_v47  ;;  %v1614_v47 = vld [vmem:[%s2140_s7 + $0x10] sm:$0xff]   ;;  %v1566_v4 = vunpack.i.h.bf16 %v1564_v63  ;;  %v1565_v5 = vunpack.i.l.bf16 %v1564_v63 }
 0x795   :  { %1494 = vmatpush3.bf16.msra.mxu1 %v1611_v58  ;;  %1505 = vmatprep.mubr.msk.bf16.mxu1 %vm1692_vm5, %v1691_v13 }
 0x796   :  { %1495 = vmatprep.subr.bf16.mxu1 %v1691_v13 }
 0x799   :  { %1496 = vmatpush3.bf16.msra.mxu1 %v1612_v10 }
 0x79a   :  { %1497 = vmatprep.subr.bf16.mxu1 %v1691_v13 }
 0x79d   :  { %1498 = vmatpush3.bf16.msra.mxu1 %v1613_v59 }
 0x79e   :  { %1499 = vmatprep.subr.bf16.mxu1 %v1691_v13 }
 0x7a1   :  { %1500 = vmatpush3.bf16.msra.mxu1 %v1614_v47 }
 0x7a2   :  { %1501 = vmatprep.subr.bf16.mxu1 %v1691_v13 }
 0x7a5   :  { %1502 = vmatpush3.bf16.msra.mxu1 %v1615_v60 }
 0x7a6   :  { %1503 = vmatprep.subr.bf16.mxu1 %v1691_v13 }
 0x7a9   :  { %1504 = vmatpush3.bf16.msra.mxu1 %v1616_v61 }
 0x850   :  { %v946_v62 = vpop.f32.mrf.mxu0 }
 0x851   :  { %v953_v36 = vmul.f32 %v946_v62, %v892_v45  ;;  %v1618_v45 = vld [vmem:[%s2141_s8 + $0x8] sm:$0xff]  }
 0x852   :  { %v1485_v11 = vpop.f32.mrf.mxu0  ;;  %1512 = vmatpush3.bf16.msra.mxu0 %v1618_v45 }
 0x853   :  { %v1017_v12 = vsel %vm502_vm2, %v953_v36, %v1565_v5  ;;  %1513 = vmatprep.subr.bf16.mxu0 %v1691_v13 }
 0x854   :  { %v949_v39 = vpop.f32.mrf.mxu0  ;;  %v1491_v3 = vpop.f32.mrf.mxu1 }
 0x855   :  { %v954_v6 = vmul.f32 %v949_v39, %v895_v51  ;;  %v1007_v15 = vmul.f32 %v2012_v32, %v1491_v3  ;;  %v1619_v51 = vld [vmem:[%s2141_s8] sm:$0xff]   ;;  %s1695_s8 = smov [#allocation4]  }
 0x856   :  { %v1486_v7 = vpop.f32.mrf.mxu0  ;;  %v990_v8 = vpop.f32.mrf.mxu1  ;;  %1514 = vmatpush3.bf16.msra.mxu0 %v1619_v51  ;;  %s1297_s30 = sshll.u32 %s1695_s8, 4  ;;  %s1298_s30 = int_to_ptr.vmem [resolvable:$true] %s1297_s30 }
 0x857   :  { %v1018_v14 = vsel %vm502_vm2, %v954_v6, %v1566_v4  ;;  %v1005_v20 = vmul.f32 %v2006_v0, %v990_v8  ;;  %v1258_v24 = vsel %vm713_vm4, %v1007_v15, 0.0  ;;  %p1647_p1 = scmp.lt.s32.totalorder %s1298_s30, %s1298_s30 }
 0x858   :  { %v1019_v17 = vpack.c.bf16 %v1018_v14, %v1017_v12  ;;  %v1492_v19 = vpop.f32.mrf.mxu1 }
 0x859   :  { %v1008_v21 = vmul.f32 %v2008_v1, %v1492_v19  ;;  %v1256_v28 = vsel %vm713_vm4, %v1005_v20, 0.0 }
 0x85a   :  { %v993_v22 = vpop.f32.mrf.mxu1  ;;  %1506 = vmatmul.mubr.msk.bf16.vlgmr.msra.gmra.mxu1 %vm1068_vm9, %v1019_v17 }
 0x85b   :  { %v1259_v27 = vsel %vm713_vm4, %v1008_v21, 0.0  ;;  %v1006_v23 = vmul.f32 %v2010_v34, %v993_v22 }
 0x85c   :  { %v1397_v25 = vpack.c.bf16 %v1259_v27, %v1258_v24 }
 0x85d   :  { %v1257_v32 = vsel %vm713_vm4, %v1006_v23, 0.0 }
 0x85e   :  { %1399 = vst [vmem:[#allocation4 + $0x8] sm:$0xff] %v1397_v25   ;;  %v1392_v29 = vpack.c.bf16 %v1257_v32, %v1256_v28 }
 0x860   :  { %1393 = vst [vmem:[#allocation4] sm:$0xff] %v1392_v29  }
 0x91a   :  { %v1106_v30 = vpop.f32.mrf.mxu1 }
 0x91b   :  { %v1113_v0 = vsub.f32 0.0, %v1106_v30 }
 0x91c   :  { %v1507_v31 = vpop.f32.mrf.mxu1 }
 0x91d   :  { %v1115_v1 = vmul.f32 1.442695, %v1113_v0 }
 0x91e   :  { %v1109_v16 = vpop.f32.mrf.mxu1 }
 0x91f   :  { %1634 = vpow2.f32 %v1115_v1  ;;  %v1114_v18 = vsub.f32 0.0, %v1109_v16 }
 0x920   :  { %v1508_v33 = vpop.f32.mrf.mxu1 }
 0x921   :  { %v1117_v35 = vmul.f32 1.442695, %v1114_v18 }
 0x923   :  { %1636 = vpow2.f32 %v1117_v35 }
 0x92c   :  { %v1635_v37 = vpop.eup %1634 }
 0x92d   :  { %v1119_v34 = vadd.f32 1.0, %v1635_v37 }
 0x92f   :  { %1638 = vrcp.f32 %v1119_v34 }
 0x930   :  { %v1637_v38 = vpop.eup %1636 }
 0x931   :  { %v1120_v40 = vadd.f32 1.0, %v1637_v38 }
 0x933   :  { %1640 = vrcp.f32 %v1120_v40 }
 0x93c   :  { %v1639_v26 = vpop.eup %1638 }
 0x93d   :  { %v1137_v41 = vsub.f32 1.0, %v1639_v26 }
 0x93f   :  { %1141 = vperm.xlu1 %1567, %v1137_v41  }
 0x940   :  { %v1641_v2 = vpop.eup %1640 }
 0x941   :  { %v1138_v42 = vsub.f32 1.0, %v1641_v2 }
 0x943   :  { %1146 = vperm.xlu1 %1567, %v1138_v42  }
 0x947   :  { %1127 = vperm.xlu1 %1567, %v1639_v26  }
 0x94b   :  { %1132 = vperm.xlu1 %1567, %v1641_v2  }
 0x9ba   :  { %v1142_v44 = vpop.permute.xlu1 %1141 }
 0x9bb   :  { %v1149_v46 = vmul.f32 %v1142_v44, %v953_v36 }
 0x9bd   :  { %1153 = vrot.lane.b32.xlu1 %v1149_v46, %s1689_s25 }
 0x9be   :  { %v1147_v49 = vpop.permute.xlu1 %1146 }
 0x9bf   :  { %v1150_v52 = vmul.f32 %v1147_v49, %v954_v6 }
 0x9c1   :  { %1155 = vrot.lane.b32.xlu1 %v1150_v52, %s1689_s25  ;;  %s1642_s25 = scalar_lea.vmem %s1298_s30, 256 }
 0x9c2   :  { %v1128_v9 = vpop.permute.xlu1 %1127  ;;  %p1643_p0 = scmp.ne.s32.totalorder %s1298_s30, %s1642_s25  ;;  %p1648_p2 = scmp.lt.s32.totalorder %s1642_s25, %s1642_s25 }
 0x9c3   :  { %v1135_v57 = vmul.f32 %v1128_v9, %v1872_v48 }
 0x9c4   :  { %p1649_p3 = por %p1648_p2, %p1647_p1 }
 0x9c6   :  { %v1133_v55 = vpop.permute.xlu1 %1132  ;;  %p1650_p4 = pnand %p1649_p3, %p1643_p0 }
 0x9c7   :  { %v1136_v53 = vmul.f32 %v1133_v55, %v1874_v50 }
 0xa2f   :  { %v1154_v56 = vpop.permute.xlu1 %1153 }
 0xa30   :  { %v1159_v58 = vadd.f32 %v1154_v56, %v1135_v57 }
 0xa33   :  { %v1156_v54 = vpop.permute.xlu1 %1155 }
 0xa34   :  { %v1160_v10 = vadd.f32 %v1156_v54, %v1136_v53 }
 0xa36   :  { %v1161_v59 = vpack.c.bf16 %v1160_v10, %v1159_v58 }
 0xa38   :  { %1176 = vrot.lane.b32.xlu1 %v1161_v59, %s1694_s29 }
 0xaaa   :  { %v1177_v47 = vpop.permute.xlu1 %1176 }
 0xaab   :  { %1516 = vmatmul.mubr.msk.bf16.vlgmr.msra.gmra.mxu0 %vm502_vm2, %v1177_v47 }
 0xaac   :  { %1653 = shalt.err (!%p1650_p4)
}
 0xaad   :  { %s1696_s13 = smov 64   ;;  %s1697_s14 = smov 4   ;;  %v1367_v48 = vld [vmem:[%s2142_s9] ss:$0 sm:$0xff] }
 0xaae   :  { %1303 = dma.vmem_to_hbm [thread:$0]  %s1298_s30, 256, %s2145_s12, [#allocation5], %s1696_s13, %s1696_s13, %s1697_s14  }
 0xaaf   :  { %s1698_s27 = smov [#allocation2]  }
 0xab0   :  { %s1285_s17 = sshll.u32 %s1698_s27, 4  ;;  %s1286_s17 = int_to_ptr.vmem [resolvable:$true] %s1285_s17 }
 0xab1   :  { %s1662_s12 = scalar_lea.vmem %s1286_s17, 128  ;;  %p1667_p6 = scmp.lt.s32.totalorder %s1286_s17, %s1286_s17 }
 0xab2   :  { %p1663_p5 = scmp.ne.s32.totalorder %s1286_s17, %s1662_s12  ;;  %p1668_p7 = scmp.lt.s32.totalorder %s1662_s12, %s1662_s12 }
 0xab4   :  { %p1669_p8 = por %p1668_p7, %p1667_p6 }
 0xab6   :  { %p1670_p9 = pnand %p1669_p8, %p1663_p5 }
 0xb6b   :  { %v1233_v50 = vpop.f32.mrf.mxu0 }
 0xb6c   :  { %v1234_v13 = vadd.f32 %v1367_v48, %v1233_v50 }
 0xb6d   :  { %v1517_v60 = vpop.f32.mrf.mxu0 }
 0xb6e   :  { %v1242_v62 = vmul.f32 0.01, %v1234_v13  ;;  %vm1240_vm10 = vcmp.ge.f32.partialorder %v1234_v13, 0.0 }
 0xb6f   :  { %v1236_v61 = vpop.f32.mrf.mxu0 }
 0xb70   :  { %v1237_v63 = vadd.f32 %v1367_v48, %v1236_v61  ;;  %v1244_v39 = vsel %vm1240_vm10, %v1234_v13, %v1242_v62 }
 0xb71   :  { %v1518_v11 = vpop.f32.mrf.mxu0 }
 0xb72   :  { %vm1241_vm11 = vcmp.ge.f32.partialorder %v1237_v63, 0.0  ;;  %v1243_v36 = vmul.f32 0.01, %v1237_v63 }
 0xb74   :  { %v1245_v3 = vsel %vm1241_vm11, %v1237_v63, %v1243_v36 }
 0xb75   :  { %v1387_v4 = vpack.c.bf16 %v1245_v3, %v1244_v39 }
 0xb77   :  { %1388 = vst [vmem:[#allocation2] sm:$0xff] %v1387_v4  }
 0xb78   :  { %1673 = shalt.err (!%p1670_p9)
}
 0xb79   :  { %1291 = dma.vmem_to_hbm [thread:$0]  %s1286_s17, 128, %s2144_s11, [#allocation3], %s1696_s13, %s1696_s13, %s1697_s14  }
 0xb7a   :  { %1682 = dma.done.wait [#allocation3], 128  }
 0xb7b   :  { %1683 = vsyncadd [#allocation3], 4294967168 }
 0xb7c   :  { %1684 = dma.done.wait [#allocation5], 256  }
 0xb7d   :  { %1685 = vsyncadd [#allocation5], 4294967040 }
 0xb7e   :  { %1310 = vsyncpa [#allocation3], 1 }
 0xb7f   :  { %1311 = vsyncpa [#allocation5], 1 }

</bundles_post_ra>
